<compile_context>
chip_gen: v5e
topology: v5e:2x2
jax: 0.10.0
libtpu: 0.0.40
codegen_flags: <defaults>
</compile_context>

<pallas_src>
import functools

import jax
import jax.numpy as jnp
from jax.experimental import pallas as pl
from jax.experimental.pallas import tpu as pltpu


def _round_up(x, m):
    return ((x + m - 1) // m) * m


def _vmem_budget_cap():
    """Usable per-core VMEM: physical capacity minus ~16 MiB Mosaic/internal headroom."""
    try:
        cap = int(getattr(pltpu.get_tpu_info(), "vmem_capacity_bytes", 64 << 20))
    except Exception:  # conservative fallback if the query is unavailable
        cap = 64 << 20
    return max(cap - (16 << 20), 32 << 20)   # ~48 MiB on v7x, ~112 MiB on v5e/v6e


def _pick_feature_tile(total, cap=512, mult=128):
    """Largest multiple of 128 that divides `total` and is <= cap (total is 128-aligned)."""
    t = max(mult, (min(cap, total) // mult) * mult)
    while total % t:
        t -= mult
    return t


# ---------------------------------------------------------------------------
# Kernels
# ---------------------------------------------------------------------------
def _fused_mlp_kernel(*refs, num_linear, compute_dtype):
    """refs = (x_ref, w0, b0, w1, b1, ..., out_ref) — one batch tile per grid step.

    Weights/biases are whole-array VMEM-resident refs (single-buffered)."""
    x_ref = refs[0]
    out_ref = refs[-1]
    param_refs = refs[1:-1]

    h = x_ref[...]                              # already compute_dtype (host cast)
    for layer in range(num_linear):
        w = param_refs[2 * layer][...]          # (in_pad, out_pad), compute_dtype
        b = param_refs[2 * layer + 1][...]      # (1, out_pad), f32
        z = jnp.dot(h, w, preferred_element_type=jnp.float32) + b
        if layer < num_linear - 1:
            # ReLU (Dropout == identity at inference); cast back for the next MXU pass.
            h = jnp.maximum(z, 0.0).astype(compute_dtype)
        else:
            # Sigmoid via tanh: single EUP transcendental, no VALU divide, no exp overflow.
            h = 0.5 * jnp.tanh(0.5 * z) + 0.5
    out_ref[...] = h.astype(out_ref.dtype)


def _linear_act_kernel(x_ref, w_ref, b_ref, o_ref, *, activation):
    """Streaming fallback: one (batch tile, N tile) block of a single Linear(+act)."""
    z = jnp.dot(x_ref[...], w_ref[...], preferred_element_type=jnp.float32) + b_ref[...]
    if activation == "relu":
        o_ref[...] = jnp.maximum(z, 0.0).astype(o_ref.dtype)
    else:  # sigmoid
        o_ref[...] = (0.5 * jnp.tanh(0.5 * z) + 0.5).astype(o_ref.dtype)


# ---------------------------------------------------------------------------
# Wrappers
# ---------------------------------------------------------------------------
def _forward_streaming(x_p, ws, bs, tile_b, compute_dtype, budget):
    """Per-layer pallas_calls streaming weight N-tiles (large-layer / low-VMEM fallback)."""
    # TODO(synk): add a K grid axis with an f32 VMEM accumulator (pl.when init/finalize,
    # reduction axis last and "arbitrary") if a single (K_pad, tn) weight block outgrows VMEM.
    num_linear = len(ws)
    itemsize = jnp.dtype(compute_dtype).itemsize
    h = x_p
    for l in range(num_linear):
        Kp, Np = ws[l].shape
        tn = _pick_feature_tile(Np)
        last = (l == num_linear - 1)
        out_dtype = jnp.float32 if last else compute_dtype
        Bp = h.shape[0]
        need = (2 * tile_b * Kp * itemsize + 2 * Kp * tn * itemsize + 2 * tn * 4
                + 2 * tile_b * tn * 4 + tile_b * tn * 4 + (8 << 20))
        h = pl.pallas_call(
            functools.partial(_linear_act_kernel,
                              activation="sigmoid" if last else "relu"),
            out_shape=jax.ShapeDtypeStruct((Bp, Np), out_dtype),
            grid=(Bp // tile_b, Np // tn),
            in_specs=[pl.BlockSpec((tile_b, Kp), lambda i, j: (i, 0)),
                      pl.BlockSpec((Kp, tn), lambda i, j: (0, j)),
                      pl.BlockSpec((1, tn), lambda i, j: (0, j))],
            out_specs=pl.BlockSpec((tile_b, tn), lambda i, j: (i, j)),
            compiler_params=pltpu.CompilerParams(
                dimension_semantics=("parallel", "parallel"),
                vmem_limit_bytes=int(min(max(need, 16 << 20), budget))),
        )(h, ws[l], bs[l])
    return h


def build_classification_forward(x, params, *, tile_b=None, compute_dtype=jnp.bfloat16,
                                 force_streaming=False):
    """params: list of (W, b) with W shape (in, out), b shape (1, out).

    Default compute_dtype is bf16 (bf16 operands, f32 MXU accumulation) — bf16 is the
    native MXU dtype on v5e, v6e and v7x and halves weight/activation DMA.  Pass
    compute_dtype=jnp.float32 for strict f32 parity."""
    num_linear = len(params)
    B, d_in = x.shape
    dims = [d_in] + [w.shape[1] for w, _ in params]
    out_dim = dims[-1]

    # Lane-dense feature dims (multiples of 128 — MXU-native on all generations).
    dims_pad = [_round_up(d, 128) for d in dims]

    budget = _vmem_budget_cap()
    itemsize = jnp.dtype(compute_dtype).itemsize
    # Sublane packing: bf16 packs 16 rows / vreg, f32 packs 8.
    sub = 16 if itemsize == 2 else 8

    # Batch tile: default smaller where VMEM is tight (v7x ~48 MiB usable) and larger on
    # v5e/v6e; cap so the grid has >=4 steps when the batch allows (megacore split on v7x
    # plus double-buffered x/out DMA).
    if tile_b is None:
        tile_b = 256 if budget < (64 << 20) else 512
    b_aligned = _round_up(B, sub)
    tile_b = max(sub, min(_round_up(tile_b, sub), b_aligned))
    tile_b = min(tile_b, max(sub, _round_up(b_aligned // 4, sub)))
    b_pad = _round_up(B, tile_b)

    # Host-side cast + zero-pad: exact through ReLU layers (zero rows/cols contribute zero);
    # padded batch rows / output columns are sliced off at the end.
    x_p = jnp.pad(x.astype(compute_dtype), ((0, b_pad - B), (0, dims_pad[0] - d_in)))
    ws, bs = [], []
    for l, (w, b) in enumerate(params):
        ws.append(jnp.pad(w.astype(compute_dtype),
                          ((0, dims_pad[l] - dims[l]), (0, dims_pad[l + 1] - dims[l + 1]))))
        bs.append(jnp.pad(b.astype(jnp.float32), ((0, 0), (0, dims_pad[l + 1] - dims[l + 1]))))

    param_bytes = sum(w.size * itemsize for w in ws) + sum(b.size * 4 for b in bs)
    max_dim = max(dims_pad)
    # VMEM need for the fused path: single-buffered resident params + double-buffered x/out
    # tiles + ~3x largest f32 intermediate + bf16 lhs copy + headroom.
    fused_need = (param_bytes
                  + 2 * tile_b * dims_pad[0] * itemsize
                  + 2 * tile_b * dims_pad[-1] * 4
                  + tile_b * max_dim * (3 * 4 + itemsize)
                  + (8 << 20))

    if force_streaming or fused_need > budget:
        # Weights don't fit (or caller forces it): stream per-layer N-tiles instead.
        out_p = _forward_streaming(x_p, ws, bs, tile_b, compute_dtype, budget)
        return out_p[:B, :out_dim]

    flat_params = []
    for w, b in zip(ws, bs):
        flat_params.extend([w, b])

    grid = (b_pad // tile_b,)
    in_specs = [pl.BlockSpec((tile_b, dims_pad[0]), lambda i: (i, 0))]
    for _ in range(2 * num_linear):
        # Whole array, VMEM-resident, single-buffered: no re-DMA and no 2x double-buffer cost.
        in_specs.append(pl.BlockSpec(memory_space=pltpu.MemorySpace.VMEM))
    out_spec = pl.BlockSpec((tile_b, dims_pad[-1]), lambda i: (i, 0))

    # Cost estimate for the XLA scheduler.
    flops = 2 * b_pad * sum(dims_pad[l] * dims_pad[l + 1] for l in range(num_linear))
    bytes_accessed = (x_p.size * x_p.dtype.itemsize + param_bytes
                      + b_pad * dims_pad[-1] * 4)
    cost = pl.CostEstimate(flops=flops,
                           transcendentals=b_pad * dims_pad[-1],
                           bytes_accessed=bytes_accessed)

    kernel = functools.partial(_fused_mlp_kernel, num_linear=num_linear,
                               compute_dtype=compute_dtype)

    out_p = pl.pallas_call(
        kernel,
        out_shape=jax.ShapeDtypeStruct((b_pad, dims_pad[-1]), jnp.float32),
        grid=grid,
        in_specs=in_specs,
        out_specs=out_spec,
        compiler_params=pltpu.CompilerParams(
            dimension_semantics=("parallel",),      # megacore batch sharding on v7x
            vmem_limit_bytes=int(min(max(fused_need, 16 << 20), budget))),
        cost_estimate=cost,
    )(x_p, *flat_params)

    return out_p[:B, :out_dim]


def init_params(key, input_shape, hidden_size, output_size, nb_layers):
    """Deterministic PyTorch-style Linear init: U(-1/sqrt(fan_in), 1/sqrt(fan_in))."""
    dims = [input_shape] + [hidden_size] * nb_layers + [output_size]
    params = []
    for i in range(len(dims) - 1):
        fan_in, fan_out = dims[i], dims[i + 1]
        key, kw, kb = jax.random.split(key, 3)
        bound = 1.0 / (fan_in ** 0.5)
        w = jax.random.uniform(kw, (fan_in, fan_out), jnp.float32, -bound, bound)
        b = jax.random.uniform(kb, (1, fan_out), jnp.float32, -bound, bound)
        params.append((w, b))
    return params


if __name__ == "__main__":
    # Small shapes consistent with the module:
    #   input_shape=32, hidden_size=64, output_size=16, nb_layers=2, batch=8
    B, input_shape, hidden_size, output_size, nb_layers = 8, 32, 64, 16, 2

    key = jax.random.PRNGKey(0)
    key, kx = jax.random.split(key)
    x = jax.random.normal(kx, (B, input_shape), jnp.float32)
    params = init_params(key, input_shape, hidden_size, output_size, nb_layers)

    # Pure-JAX reference (eval-mode dropout = identity).
    h = x
    for i, (w, b) in enumerate(params):
        z = h @ w + b
        h = jnp.maximum(z, 0.0) if i < len(params) - 1 else jax.nn.sigmoid(z)

    # Default path: bf16 operands + f32 MXU accumulation, fused, weights VMEM-resident.
    out = jax.block_until_ready(build_classification_forward(x, params))
    assert out.shape == (B, output_size)
    assert jnp.allclose(out, h, atol=2e-2), "bf16 fused mismatch vs reference"

    # f32 path — strict numerical parity with the reference.
    out_f32 = jax.block_until_ready(
        build_classification_forward(x, params, compute_dtype=jnp.float32))
    assert out_f32.shape == (B, output_size)
    assert jnp.allclose(out_f32, h, atol=1e-5), "f32 fused mismatch vs reference"

    # Streaming (large-layer) fallback path — exercised explicitly at small shapes.
    out_stream = jax.block_until_ready(
        build_classification_forward(x, params, force_streaming=True))
    assert out_stream.shape == (B, output_size)
    assert jnp.allclose(out_stream, h, atol=2e-2), "streaming mismatch vs reference"

    print("KERNEL_OK")
</pallas_src>

<mosaic_0001>
module attributes {stable_mosaic.version = 11 : i64} {
  func.func @_fused_mlp_kernel(%arg0: i32, %arg1: memref<16x128xbf16, #tpu.memory_space<vmem>>, %arg2: memref<128x128xbf16, #tpu.memory_space<vmem>>, %arg3: memref<1x128xf32, #tpu.memory_space<vmem>>, %arg4: memref<128x128xbf16, #tpu.memory_space<vmem>>, %arg5: memref<1x128xf32, #tpu.memory_space<vmem>>, %arg6: memref<128x128xbf16, #tpu.memory_space<vmem>>, %arg7: memref<1x128xf32, #tpu.memory_space<vmem>>, %arg8: memref<16x128xf32, #tpu.memory_space<vmem>>) attributes {dimension_semantics = [#tpu.dimension_semantics<parallel>], iteration_bounds = array<i64: 1>, scalar_prefetch = 0 : i64, scratch_operands = 0 : i64, tpu.core_type = #tpu.core_type<tc>, window_params = [{transform_indices = @transform_0, window_bounds = array<i64: 16, 128>}, {pipeline_mode = #tpu.pipeline_mode<synchronous>, transform_indices = @transform_1, window_bounds = array<i64: 128, 128>}, {pipeline_mode = #tpu.pipeline_mode<synchronous>, transform_indices = @transform_2, window_bounds = array<i64: 1, 128>}, {pipeline_mode = #tpu.pipeline_mode<synchronous>, transform_indices = @transform_3, window_bounds = array<i64: 128, 128>}, {pipeline_mode = #tpu.pipeline_mode<synchronous>, transform_indices = @transform_4, window_bounds = array<i64: 1, 128>}, {pipeline_mode = #tpu.pipeline_mode<synchronous>, transform_indices = @transform_5, window_bounds = array<i64: 128, 128>}, {pipeline_mode = #tpu.pipeline_mode<synchronous>, transform_indices = @transform_6, window_bounds = array<i64: 1, 128>}, {transform_indices = @transform_7, window_bounds = array<i64: 16, 128>}]} {
    %c0 = arith.constant 0 : index
    %c0_0 = arith.constant 0 : index
    %0 = vector.load %arg1[%c0, %c0_0] : memref<16x128xbf16, #tpu.memory_space<vmem>>, vector<16x128xbf16>
    %c0_1 = arith.constant 0 : index
    %c0_2 = arith.constant 0 : index
    %1 = vector.load %arg2[%c0_1, %c0_2] : memref<128x128xbf16, #tpu.memory_space<vmem>>, vector<128x128xbf16>
    %c0_3 = arith.constant 0 : index
    %c0_4 = arith.constant 0 : index
    %2 = vector.load %arg3[%c0_3, %c0_4] : memref<1x128xf32, #tpu.memory_space<vmem>>, vector<1x128xf32>
    %cst = arith.constant dense<0.000000e+00> : vector<16x128xf32>
    %3 = tpu.matmul %0, %1, %cst {dimension_numbers = #tpu.dot_dimension_numbers<[1], [0], [0], [1], [0, 0, 1, 1], [], []>} : vector<16x128xbf16>, vector<128x128xbf16>, vector<16x128xf32> -> vector<16x128xf32>
    %4 = vector.broadcast %2 : vector<1x128xf32> to vector<16x128xf32>
    %5 = arith.addf %3, %4 : vector<16x128xf32>
    %cst_5 = arith.constant 0.000000e+00 : f32
    %6 = vector.broadcast %cst_5 : f32 to vector<16x128xf32>
    %7 = arith.maximumf %5, %6 : vector<16x128xf32>
    %8 = arith.truncf %7 : vector<16x128xf32> to vector<16x128xbf16>
    %c0_6 = arith.constant 0 : index
    %c0_7 = arith.constant 0 : index
    %9 = vector.load %arg4[%c0_6, %c0_7] : memref<128x128xbf16, #tpu.memory_space<vmem>>, vector<128x128xbf16>
    %c0_8 = arith.constant 0 : index
    %c0_9 = arith.constant 0 : index
    %10 = vector.load %arg5[%c0_8, %c0_9] : memref<1x128xf32, #tpu.memory_space<vmem>>, vector<1x128xf32>
    %cst_10 = arith.constant dense<0.000000e+00> : vector<16x128xf32>
    %11 = tpu.matmul %8, %9, %cst_10 {dimension_numbers = #tpu.dot_dimension_numbers<[1], [0], [0], [1], [0, 0, 1, 1], [], []>} : vector<16x128xbf16>, vector<128x128xbf16>, vector<16x128xf32> -> vector<16x128xf32>
    %12 = vector.broadcast %10 : vector<1x128xf32> to vector<16x128xf32>
    %13 = arith.addf %11, %12 : vector<16x128xf32>
    %cst_11 = arith.constant 0.000000e+00 : f32
    %14 = vector.broadcast %cst_11 : f32 to vector<16x128xf32>
    %15 = arith.maximumf %13, %14 : vector<16x128xf32>
    %16 = arith.truncf %15 : vector<16x128xf32> to vector<16x128xbf16>
    %c0_12 = arith.constant 0 : index
    %c0_13 = arith.constant 0 : index
    %17 = vector.load %arg6[%c0_12, %c0_13] : memref<128x128xbf16, #tpu.memory_space<vmem>>, vector<128x128xbf16>
    %c0_14 = arith.constant 0 : index
    %c0_15 = arith.constant 0 : index
    %18 = vector.load %arg7[%c0_14, %c0_15] : memref<1x128xf32, #tpu.memory_space<vmem>>, vector<1x128xf32>
    %cst_16 = arith.constant dense<0.000000e+00> : vector<16x128xf32>
    %19 = tpu.matmul %16, %17, %cst_16 {dimension_numbers = #tpu.dot_dimension_numbers<[1], [0], [0], [1], [0, 0, 1, 1], [], []>} : vector<16x128xbf16>, vector<128x128xbf16>, vector<16x128xf32> -> vector<16x128xf32>
    %20 = vector.broadcast %18 : vector<1x128xf32> to vector<16x128xf32>
    %21 = arith.addf %19, %20 : vector<16x128xf32>
    %cst_17 = arith.constant 5.000000e-01 : f32
    %22 = vector.broadcast %cst_17 : f32 to vector<16x128xf32>
    %23 = arith.mulf %22, %21 : vector<16x128xf32>
    %24 = math.tanh %23 : vector<16x128xf32>
    %cst_18 = arith.constant 5.000000e-01 : f32
    %25 = vector.broadcast %cst_18 : f32 to vector<16x128xf32>
    %26 = arith.mulf %25, %24 : vector<16x128xf32>
    %cst_19 = arith.constant 5.000000e-01 : f32
    %27 = vector.broadcast %cst_19 : f32 to vector<16x128xf32>
    %28 = arith.addf %26, %27 : vector<16x128xf32>
    %c0_20 = arith.constant 0 : index
    %c0_21 = arith.constant 0 : index
    %29 = vector.load %arg8[%c0_20, %c0_21] : memref<16x128xf32, #tpu.memory_space<vmem>>, vector<16x128xf32>
    tpu.vector_store %arg8[%c0_20, %c0_21], %28 {strides = array<i32>} : memref<16x128xf32, #tpu.memory_space<vmem>>, vector<16x128xf32>,
    return
  }
  func.func @transform_0(%arg0: i32) -> (i32, i32) {
    %c0_i32 = arith.constant 0 : i32
    %c0_i32_0 = arith.constant 0 : i32
    return %arg0, %c0_i32 : i32, i32
  }
  func.func @transform_1(%arg0: i32) -> (i32, i32) {
    %c0_i32 = arith.constant 0 : i32
    %c0_i32_0 = arith.constant 0 : i32
    %c0_i32_1 = arith.constant 0 : i32
    return %c0_i32, %c0_i32_0 : i32, i32
  }
  func.func @transform_2(%arg0: i32) -> (i32, i32) {
    %c0_i32 = arith.constant 0 : i32
    %c0_i32_0 = arith.constant 0 : i32
    %c0_i32_1 = arith.constant 0 : i32
    return %c0_i32, %c0_i32_0 : i32, i32
  }
  func.func @transform_3(%arg0: i32) -> (i32, i32) {
    %c0_i32 = arith.constant 0 : i32
    %c0_i32_0 = arith.constant 0 : i32
    %c0_i32_1 = arith.constant 0 : i32
    return %c0_i32, %c0_i32_0 : i32, i32
  }
  func.func @transform_4(%arg0: i32) -> (i32, i32) {
    %c0_i32 = arith.constant 0 : i32
    %c0_i32_0 = arith.constant 0 : i32
    %c0_i32_1 = arith.constant 0 : i32
    return %c0_i32, %c0_i32_0 : i32, i32
  }
  func.func @transform_5(%arg0: i32) -> (i32, i32) {
    %c0_i32 = arith.constant 0 : i32
    %c0_i32_0 = arith.constant 0 : i32
    %c0_i32_1 = arith.constant 0 : i32
    return %c0_i32, %c0_i32_0 : i32, i32
  }
  func.func @transform_6(%arg0: i32) -> (i32, i32) {
    %c0_i32 = arith.constant 0 : i32
    %c0_i32_0 = arith.constant 0 : i32
    %c0_i32_1 = arith.constant 0 : i32
    return %c0_i32, %c0_i32_0 : i32, i32
  }
  func.func @transform_7(%arg0: i32) -> (i32, i32) {
    %c0_i32 = arith.constant 0 : i32
    %c0_i32_0 = arith.constant 0 : i32
    return %arg0, %c0_i32 : i32, i32
  }
}

</mosaic_0001>

<bundles_post_ra>
// kernel: tpu_custom_call.1
= control target key start
LH: loop header
LB: loop body
LE: loop exit
PB: predicated region body
PF: predicated region fallthrough
CT: control target
= control target key end

     0   :  { %12 = vsyncpa [#allocation3], 0  ;;  %s723_s0 = inlined_call_operand.hbm [shape: bf16[16,128], index: 0, kind: input, shape index: {}]   ;;  %s724_s1 = inlined_call_operand.hbm [shape: bf16[128,128], index: 1, kind: input, shape index: {}]   ;;  %s725_s2 = inlined_call_operand.vmem [shape: f32[1,128], index: 2, kind: input, shape index: {}]   ;;  %s726_s3 = inlined_call_operand.hbm [shape: bf16[128,128], index: 3, kind: input, shape index: {}]   ;;  %s727_s4 = inlined_call_operand.vmem [shape: f32[1,128], index: 4, kind: input, shape index: {}]   ;;  %s728_s5 = inlined_call_operand.hbm [shape: bf16[128,128], index: 5, kind: input, shape index: {}]   ;;  %s729_s6 = inlined_call_operand.vmem [shape: f32[1,128], index: 6, kind: input, shape index: {}]   ;;  %s730_s7 = inlined_call_operand.hbm [shape: f32[16,128], index: 7, kind: output, shape index: {}]  }
   0x1   :  { %13 = vsyncpa [#allocation6], 0 }
   0x2   :  { %14 = vsyncpa [#allocation9], 0 }
   0x3   :  { %15 = vsyncpa [#allocation4], 0  ;;  %s33_s26 = sshll.u32 %s724_s1, 4  ;;  %s650_s27 = smov [#allocation5]   ;;  %s34_s26 = int_to_ptr.hbm [resolvable:$true] %s33_s26 }
   0x4   :  { %s35_s28 = sshll.u32 %s650_s27, 4  ;;  %s20_s8 = sshll.u32 %s723_s0, 4  ;;  %s36_s28 = int_to_ptr.vmem [resolvable:$true] %s35_s28  ;;  %s21_s8 = int_to_ptr.hbm [resolvable:$true] %s20_s8 }
   0x5   :  { %s651_s9 = smov 64   ;;  %s652_s10 = smov 4  }
   0x6   :  { %41 = dma.hbm_to_vmem [thread:$0]  %s34_s26, 1024, %s36_s28, [#allocation6], %s651_s9, %s651_s9, %s652_s10  }
   0x7   :  { %s653_s11 = smov [#allocation2]   ;;  %s48_s15 = sshll.u32 %s726_s3, 4  ;;  %s49_s15 = int_to_ptr.hbm [resolvable:$true] %s48_s15 }
   0x8   :  { %s22_s12 = sshll.u32 %s653_s11, 4  ;;  %s63_s17 = sshll.u32 %s728_s5, 4  ;;  %s23_s12 = int_to_ptr.vmem [resolvable:$true] %s22_s12  ;;  %s64_s17 = int_to_ptr.hbm [resolvable:$true] %s63_s17 }
   0x9   :  { %28 = dma.hbm_to_vmem [thread:$0]  %s21_s8, 128, %s23_s12, [#allocation3], %s651_s9, %s651_s9, %s652_s10  }
   0xa   :  { %s654_s18 = smov [#allocation7]   ;;  %s655_s0 = smov [#allocation8]  }
   0xb   :  { %s50_s19 = sshll.u32 %s654_s18, 4  ;;  %s65_s20 = sshll.u32 %s655_s0, 4  ;;  %s51_s19 = int_to_ptr.vmem [resolvable:$true] %s50_s19  ;;  %s66_s20 = int_to_ptr.vmem [resolvable:$true] %s65_s20 }
   0xc   :  { %56 = dma.hbm_to_vmem [thread:$0]  %s49_s15, 1024, %s51_s19, [#allocation6], %s651_s9, %s651_s9, %s652_s10  }
   0xd   :  { %71 = dma.hbm_to_vmem [thread:$0]  %s64_s17, 1024, %s66_s20, [#allocation9], %s651_s9, %s651_s9, %s652_s10  }
   0xe   :  { %642 = dma.done.wait [#allocation3], 128  }
   0xf   :  { %643 = vsyncadd [#allocation3], 4294967168 }
  0x10   :  { %644 = dma.done.wait [#allocation6], 2048  }
  0x11   :  { %645 = vsyncadd [#allocation6], 4294965248 }
  0x12   :  { %646 = dma.done.wait [#allocation9], 1024  }
  0x13   :  { %647 = vsyncadd [#allocation9], 4294966272  ;;  %v489_v0 = vld [vmem:[#allocation5 + $0x38] sm:$0xff]  ;;  %v488_v1 = vld [vmem:[#allocation5 + $0x30] sm:$0xff]  ;;  %s366_s27 = sshll.u32 %s730_s7, 4  ;;  %s658_s28 = smov 8   ;;  %s367_s27 = int_to_ptr.hbm [resolvable:$true] %s366_s27 }
  0x14   :  { %166 = vmatpush.bf16.msra.mxu0 %v489_v0  ;;  %v497_v2 = vld [vmem:[#allocation7 + $0x38] sm:$0xff]  ;;  %v496_v3 = vld [vmem:[#allocation7 + $0x30] sm:$0xff]  ;;  %v487_v4 = vld [vmem:[#allocation5 + $0x28] sm:$0xff] }
  0x15   :  { %251 = vmatpush.bf16.msra.mxu1 %v497_v2  ;;  %v495_v5 = vld [vmem:[#allocation7 + $0x28] sm:$0xff]  ;;  %v486_v6 = vld [vmem:[#allocation5 + $0x20] sm:$0xff]  ;;  %v485_v8 = vld [vmem:[#allocation5 + $0x18] sm:$0xff] }
  0x16   :  { %v494_v7 = vld [vmem:[#allocation7 + $0x20] sm:$0xff]  ;;  %v484_v9 = vld [vmem:[#allocation5 + $0x10] sm:$0xff]  ;;  %v483_v10 = vld [vmem:[#allocation5 + $0x8] sm:$0xff] }
  0x17   :  { %v482_v11 = vld [vmem:[#allocation5] sm:$0xff]  ;;  %v481_v12 = vld [vmem:[#allocation2] sm:$0xff]  ;;  %v492_v14 = vld [vmem:[#allocation7 + $0x10] sm:$0xff] }
  0x18   :  { %167 = vmatpush.bf16.msra.mxu0 %v488_v1  ;;  %v493_v13 = vld [vmem:[#allocation7 + $0x18] sm:$0xff]  ;;  %v491_v15 = vld [vmem:[#allocation7 + $0x8] sm:$0xff]  ;;  %v490_v16 = vld [vmem:[#allocation7] sm:$0xff] }
  0x19   :  { %252 = vmatpush.bf16.msra.mxu1 %v496_v3  ;;  %v505_v17 = vld [vmem:[#allocation8 + $0x38] sm:$0xff]  ;;  %v504_v18 = vld [vmem:[#allocation8 + $0x30] sm:$0xff]  ;;  %v503_v19 = vld [vmem:[#allocation8 + $0x28] sm:$0xff] }
  0x1a   :  { %336 = vmatpush.bf16.msra.mxu2 %v505_v17  ;;  %v502_v20 = vld [vmem:[#allocation8 + $0x20] sm:$0xff]  ;;  %v515_v22 = vld [vmem:[%s725_s2] ss:$0 sm:$0xff]  ;;  %v500_v30 = vld [vmem:[#allocation8 + $0x10] sm:$0xff] }
  0x1b   :  { %v501_v29 = vld [vmem:[#allocation8 + $0x18] sm:$0xff]  ;;  %v499_v31 = vld [vmem:[#allocation8 + $0x8] sm:$0xff]  ;;  %v498_v32 = vld [vmem:[#allocation8] sm:$0xff] }
  0x1c   :  { %168 = vmatpush.bf16.msra.mxu0 %v487_v4  ;;  %v516_v34 = vld [vmem:[%s727_s4] ss:$0 sm:$0xff]  ;;  %s656_s4 = smov [#allocation10]  }
  0x1d   :  { %253 = vmatpush.bf16.msra.mxu1 %v495_v5  ;;  %v517_v41 = vld [vmem:[%s729_s6] ss:$0 sm:$0xff]  ;;  %s364_s24 = sshll.u32 %s656_s4, 4  ;;  %s657_s6 = smov 128   ;;  %s365_s24 = int_to_ptr.vmem [resolvable:$true] %s364_s24 }
  0x1e   :  { %337 = vmatpush.bf16.msra.mxu2 %v504_v18 }
  0x20   :  { %169 = vmatpush.bf16.msra.mxu0 %v486_v6 }
  0x21   :  { %254 = vmatpush.bf16.msra.mxu1 %v494_v7 }
  0x22   :  { %338 = vmatpush.bf16.msra.mxu2 %v503_v19 }
  0x24   :  { %170 = vmatpush.bf16.msra.mxu0 %v485_v8 }
  0x25   :  { %255 = vmatpush.bf16.msra.mxu1 %v493_v13 }
  0x26   :  { %339 = vmatpush.bf16.msra.mxu2 %v502_v20 }
  0x28   :  { %171 = vmatpush.bf16.msra.mxu0 %v484_v9 }
  0x29   :  { %256 = vmatpush.bf16.msra.mxu1 %v492_v14 }
  0x2a   :  { %340 = vmatpush.bf16.msra.mxu2 %v501_v29 }
  0x2c   :  { %172 = vmatpush.bf16.msra.mxu0 %v483_v10 }
  0x2d   :  { %257 = vmatpush.bf16.msra.mxu1 %v491_v15 }
  0x2e   :  { %341 = vmatpush.bf16.msra.mxu2 %v500_v30 }
  0x30   :  { %173 = vmatpush.bf16.msra.mxu0 %v482_v11 }
  0x31   :  { %258 = vmatpush.bf16.msra.mxu1 %v490_v16 }
  0x32   :  { %342 = vmatpush.bf16.msra.mxu2 %v499_v31 }
  0x33   :  { %174 = vmatmul.bf16.vlgmr.msra.gmra.mxu0 %v481_v12 }
  0x36   :  { %343 = vmatpush.bf16.msra.mxu2 %v498_v32 }
  0xb0   :  { %v175_v21 = vpop.f32.mrf.mxu0 }
  0xb1   :  { %v176_v23 = vadd.f32 %v515_v22, %v175_v21 }
  0xb3   :  { %v180_v26 = vmax.f32 %v176_v23, 0.0 }
  0xb8   :  { %v177_v24 = vpop.f32.mrf.mxu0 }
  0xb9   :  { %v178_v25 = vadd.f32 %v515_v22, %v177_v24 }
  0xbb   :  { %v181_v27 = vmax.f32 %v178_v25, 0.0 }
  0xbd   :  { %v182_v28 = vpack.c.bf16 %v181_v27, %v180_v26 }
  0xbf   :  { %259 = vmatmul.bf16.vlgmr.msra.gmra.mxu1 %v182_v28 }
 0x13c   :  { %v260_v33 = vpop.f32.mrf.mxu1 }
 0x13d   :  { %v261_v35 = vadd.f32 %v516_v34, %v260_v33 }
 0x13f   :  { %v265_v38 = vmax.f32 %v261_v35, 0.0 }
 0x144   :  { %v262_v36 = vpop.f32.mrf.mxu1 }
 0x145   :  { %v263_v37 = vadd.f32 %v516_v34, %v262_v36 }
 0x147   :  { %v266_v39 = vmax.f32 %v263_v37, 0.0 }
 0x149   :  { %v267_v40 = vpack.c.bf16 %v266_v39, %v265_v38 }
 0x14b   :  { %344 = vmatmul.bf16.vlgmr.msra.gmra.mxu2 %v267_v40 }
 0x1ce   :  { %v345_v42 = vpop.f32.mrf.mxu2 }
 0x1cf   :  { %v346_v43 = vadd.f32 %v517_v41, %v345_v42 }
 0x1d1   :  { %v350_v44 = vmul.f32 0.5, %v346_v43 }
 0x1d3   :  { %518 = vtanh.f32 %v350_v44 }
 0x1d6   :  { %v347_v45 = vpop.f32.mrf.mxu2 }
 0x1d7   :  { %v348_v46 = vadd.f32 %v517_v41, %v347_v45 }
 0x1d9   :  { %v519_v47 = vpop.eup %518  ;;  %v351_v48 = vmul.f32 0.5, %v348_v46 }
 0x1da   :  { %v354_v49 = vmul.f32 0.5, %v519_v47 }
 0x1db   :  { %520 = vtanh.f32 %v351_v48 }
 0x1dc   :  { %v356_v50 = vadd.f32 0.5, %v354_v49 }
 0x1de   :  { %358 = vst [vmem:[#allocation10] sm:$0xff] %v356_v50 }
 0x1e1   :  { %v521_v51 = vpop.eup %520 }
 0x1e2   :  { %v355_v52 = vmul.f32 0.5, %v521_v51 }
 0x1e4   :  { %v357_v53 = vadd.f32 0.5, %v355_v52 }
 0x1e6   :  { %359 = vst [vmem:[#allocation10 + $0x8] sm:$0xff] %v357_v53 }
 0x1e7   :  { %372 = dma.vmem_to_hbm [thread:$0]  %s365_s24, 256, %s367_s27, [#allocation4], %s657_s6, %s657_s6, %s658_s28  }
 0x1e8   :  { %648 = dma.done.wait [#allocation4], 256  }
 0x1e9   :  { %649 = vsyncadd [#allocation4], 4294967040 }
 0x1ea   :  { %377 = vsyncpa [#allocation3], 1 }
 0x1eb   :  { %378 = vsyncpa [#allocation6], 1 }
 0x1ec   :  { %379 = vsyncpa [#allocation9], 1 }
 0x1ed   :  { %380 = vsyncpa [#allocation4], 1 }

</bundles_post_ra>
